<compile_context>
chip_gen: v5e
topology: v5e:2x2
jax: 0.10.0
libtpu: 0.0.40
codegen_flags: <defaults>
</compile_context>

<pallas_src>
import functools

import jax
import jax.numpy as jnp
from jax.experimental import pallas as pl
from jax.experimental.pallas import tpu as pltpu


def _dice_kernel(x_ref, t_ref, inse_ref, l_ref, r_ref, *,
                 loss_type: str, rc: int, cps: int, total_rows: int,
                 needs_mask: bool):
    s = pl.program_id(0)   # feature-range split (parallel, one per TC on v7x)
    k = pl.program_id(1)   # row-chunk within the split (arbitrary / reduction)

    @pl.when(k == 0)
    def _():
        inse_ref[...] = jnp.zeros_like(inse_ref)
        l_ref[...] = jnp.zeros_like(l_ref)
        r_ref[...] = jnp.zeros_like(r_ref)

    # Narrow dtypes travel over HBM; accumulate in f32 on-chip (works on v5e
    # too, where the VPU has no bf16 path).
    x = x_ref[...].astype(jnp.float32)      # (b, rc, 128)
    t = t_ref[...].astype(jnp.float32)

    if needs_mask:
        # Mask rows past the true row count (tail chunk / fully-OOB chunk).
        row_start = (s * cps + k) * rc
        rows = jax.lax.broadcasted_iota(jnp.int32, (1, rc, 128), 1) + row_start
        valid = rows < total_rows
        x = jnp.where(valid, x, 0.0)
        t = jnp.where(valid, t, 0.0)

    # Lane-wise partial sums: reduce only over the row (sublane) axis per step;
    # the 128-lane reduction is deferred to the wrapper epilogue.
    inse_ref[...] += jnp.sum(x * t, axis=1)
    if loss_type == "jaccard":
        l_ref[...] += jnp.sum(x * x, axis=1)
        r_ref[...] += jnp.sum(t * t, axis=1)
    elif loss_type == "sorensen":
        l_ref[...] += jnp.sum(x, axis=1)
        r_ref[...] += jnp.sum(t, axis=1)
    else:
        raise Exception("Unknow loss_type")


def dice_loss(x, target, *, loss_type: str = "jaccard", eps: float = 1e-05,
              rc: int = None, n_splits: int = None):
    """Pallas implementation of DiceLoss.forward. Returns a scalar float32."""
    b = x.shape[0]
    xf = x.reshape(b, -1)          # keep original dtype; no f32 copy in HBM
    tf = target.reshape(b, -1)
    n = xf.shape[1]

    # Pack features into sublane-dense (b, rows, 128) slabs. Only a sub-128
    # zero pad per row is ever materialized (zeros are benign for all sums).
    # TODO(synk): an in-kernel lane mask could remove even this small pad.
    n128 = pl.cdiv(n, 128) * 128
    if n128 != n:
        pad = n128 - n
        xf = jnp.pad(xf, ((0, 0), (0, pad)))
        tf = jnp.pad(tf, ((0, 0), (0, pad)))
    total_rows = n128 // 128
    xr = xf.reshape(b, total_rows, 128)
    tr = tf.reshape(b, total_rows, 128)

    # Row-chunk size: as large as a conservative per-input-block VMEM budget
    # allows (2 inputs x 2 pipeline buffers stay far below even v5e's 16 MiB
    # default scoped VMEM), amortizing the ~0.35 us per-grid-step overhead.
    if rc is None:
        itemsize = max(xr.dtype.itemsize, tr.dtype.itemsize)
        row_bytes = b * 128 * itemsize
        budget = 2 * 1024 * 1024                      # bytes per input block
        rc = max(8, (budget // max(row_bytes, 1)) // 8 * 8)
    rc = min(rc, pl.cdiv(total_rows, 8) * 8)
    rc = max(8, (rc // 8) * 8)

    total_chunks = pl.cdiv(total_rows, rc)
    if n_splits is None:
        # Two feature-range splits use both TensorCores on v7x; on 1-TC chips
        # the parallel axis just becomes a cheap outer loop.
        n_splits = 2 if total_chunks >= 2 else 1
    n_splits = max(1, min(n_splits, total_chunks))
    cps = pl.cdiv(total_chunks, n_splits)             # chunks per split
    needs_mask = (n_splits * cps * rc) != total_rows
    max_chunk = total_chunks - 1

    kernel = functools.partial(_dice_kernel, loss_type=loss_type, rc=rc,
                               cps=cps, total_rows=total_rows,
                               needs_mask=needs_mask)

    def in_map(s_, k_):
        # Clamp so the DMA block start always lies inside the array; the
        # in-kernel mask zeroes any duplicated / out-of-range rows.
        return (0, jnp.minimum(s_ * cps + k_, max_chunk), 0)

    acc_shape = jax.ShapeDtypeStruct((n_splits, b, 128), jnp.float32)
    out_spec = pl.BlockSpec((None, b, 128), lambda s_, k_: (s_, 0, 0))

    flops = int((6 if loss_type == "jaccard" else 4) * b * n)
    bytes_accessed = int(xr.size * xr.dtype.itemsize
                         + tr.size * tr.dtype.itemsize
                         + 3 * n_splits * b * 128 * 4)
    cost = pl.CostEstimate(flops=flops, transcendentals=0,
                           bytes_accessed=bytes_accessed)

    inse_p, l_p, r_p = pl.pallas_call(
        kernel,
        out_shape=(acc_shape, acc_shape, acc_shape),
        grid_spec=pltpu.PrefetchScalarGridSpec(
            num_scalar_prefetch=0,
            grid=(n_splits, cps),
            in_specs=[
                pl.BlockSpec((b, rc, 128), in_map),
                pl.BlockSpec((b, rc, 128), in_map),
            ],
            out_specs=(out_spec, out_spec, out_spec),
        ),
        compiler_params=pltpu.CompilerParams(
            dimension_semantics=("parallel", "arbitrary")),
        cost_estimate=cost,
    )(xr, tr)

    # Tiny epilogue on (n_splits, b, 128) partials: lane reduction, dice, mean.
    inse = jnp.sum(inse_p, axis=(0, 2))
    l = jnp.sum(l_p, axis=(0, 2))
    r = jnp.sum(r_p, axis=(0, 2))
    dice = (2.0 * inse + eps) / (l + r + eps)
    return jnp.mean(dice)


def _dice_loss_ref(x, target, loss_type="jaccard", eps=1e-05):
    b = x.shape[0]
    xf = x.reshape(b, -1).astype(jnp.float32)
    tf = target.reshape(b, -1).astype(jnp.float32)
    inse = jnp.sum(xf * tf, axis=-1)
    if loss_type == "jaccard":
        l = jnp.sum(xf * xf, axis=-1)
        r = jnp.sum(tf * tf, axis=-1)
    else:
        l = jnp.sum(xf, axis=-1)
        r = jnp.sum(tf, axis=-1)
    dice = (2.0 * inse + eps) / (l + r + eps)
    return jnp.mean(dice)


if __name__ == "__main__":
    key = jax.random.PRNGKey(0)
    kx, kt, kx2, kt2 = jax.random.split(key, 4)

    # Primary case: NCHW inputs, as the PyTorch module would see them.
    B, C, H, W = 2, 4, 16, 16
    x = jax.random.uniform(kx, (B, C, H, W), dtype=jnp.float32)
    target = (jax.random.uniform(kt, (B, C, H, W)) > 0.5).astype(jnp.float32)

    out_jac = dice_loss(x, target, loss_type="jaccard")
    out_sor = dice_loss(x, target, loss_type="sorensen")
    jax.block_until_ready((out_jac, out_sor))

    ref_jac = _dice_loss_ref(x, target, "jaccard")
    ref_sor = _dice_loss_ref(x, target, "sorensen")
    assert jnp.allclose(out_jac, ref_jac, rtol=1e-5, atol=1e-6), (out_jac, ref_jac)
    assert jnp.allclose(out_sor, ref_sor, rtol=1e-5, atol=1e-6), (out_sor, ref_sor)

    # Secondary case: bf16 inputs, feature count not a multiple of 128, and a
    # forced small row-chunk so the multi-chunk / 2-split / tail-mask paths
    # are exercised.
    x2 = jax.random.uniform(kx2, (2, 5, 16, 31), dtype=jnp.float32).astype(jnp.bfloat16)
    t2 = (jax.random.uniform(kt2, (2, 5, 16, 31)) > 0.5).astype(jnp.bfloat16)
    out2_jac = dice_loss(x2, t2, loss_type="jaccard", rc=8)
    out2_sor = dice_loss(x2, t2, loss_type="sorensen", rc=8)
    jax.block_until_ready((out2_jac, out2_sor))
    ref2_jac = _dice_loss_ref(x2, t2, "jaccard")
    ref2_sor = _dice_loss_ref(x2, t2, "sorensen")
    assert jnp.allclose(out2_jac, ref2_jac, rtol=1e-4, atol=1e-5), (out2_jac, ref2_jac)
    assert jnp.allclose(out2_sor, ref2_sor, rtol=1e-4, atol=1e-5), (out2_sor, ref2_sor)

    print("KERNEL_OK")
</pallas_src>

<mosaic_0001>
module attributes {stable_mosaic.version = 11 : i64} {
  func.func @_dice_kernel(%arg0: i32, %arg1: i32, %arg2: memref<2x8x128xf32, #tpu.memory_space<vmem>>, %arg3: memref<2x8x128xf32, #tpu.memory_space<vmem>>, %arg4: memref<1x2x128xf32, #tpu.memory_space<vmem>>, %arg5: memref<1x2x128xf32, #tpu.memory_space<vmem>>, %arg6: memref<1x2x128xf32, #tpu.memory_space<vmem>>) attributes {dimension_semantics = [#tpu.dimension_semantics<parallel>, #tpu.dimension_semantics<arbitrary>], iteration_bounds = array<i64: 1, 1>, scalar_prefetch = 0 : i64, scratch_operands = 0 : i64, tpu.core_type = #tpu.core_type<tc>, window_params = [{transform_indices = @transform_0, window_bounds = array<i64: 2, 8, 128>}, {transform_indices = @transform_1, window_bounds = array<i64: 2, 8, 128>}, {transform_indices = @transform_2, window_bounds = array<i64: 1, 2, 128>}, {transform_indices = @transform_3, window_bounds = array<i64: 1, 2, 128>}, {transform_indices = @transform_4, window_bounds = array<i64: 1, 2, 128>}]} {
    %c0_i32 = arith.constant 0 : i32
    %0 = arith.cmpi eq, %arg1, %c0_i32 : i32
    %1 = arith.extui %0 : i1 to i32
    %c0_i32_0 = arith.constant 0 : i32
    %2 = arith.cmpi ne, %1, %c0_i32_0 : i32
    scf.if %2 {
      %cst_26 = arith.constant 0.000000e+00 : f32
      %29 = vector.broadcast %cst_26 : f32 to vector<2x128xf32>
      %c0_27 = arith.constant 0 : index
      %c0_28 = arith.constant 0 : index
      %c0_29 = arith.constant 0 : index
      %30 = vector.load %arg4[%c0_27, %c0_28, %c0_29] : memref<1x2x128xf32, #tpu.memory_space<vmem>>, vector<1x2x128xf32>
      %31 = vector.shape_cast %30 : vector<1x2x128xf32> to vector<2x128xf32>
      %32 = vector.shape_cast %29 : vector<2x128xf32> to vector<1x2x128xf32>
      tpu.vector_store %arg4[%c0_27, %c0_28, %c0_29], %32 {strides = array<i32>} : memref<1x2x128xf32, #tpu.memory_space<vmem>>, vector<1x2x128xf32>,
      %cst_30 = arith.constant 0.000000e+00 : f32
      %33 = vector.broadcast %cst_30 : f32 to vector<2x128xf32>
      %c0_31 = arith.constant 0 : index
      %c0_32 = arith.constant 0 : index
      %c0_33 = arith.constant 0 : index
      %34 = vector.load %arg5[%c0_31, %c0_32, %c0_33] : memref<1x2x128xf32, #tpu.memory_space<vmem>>, vector<1x2x128xf32>
      %35 = vector.shape_cast %34 : vector<1x2x128xf32> to vector<2x128xf32>
      %36 = vector.shape_cast %33 : vector<2x128xf32> to vector<1x2x128xf32>
      tpu.vector_store %arg5[%c0_31, %c0_32, %c0_33], %36 {strides = array<i32>} : memref<1x2x128xf32, #tpu.memory_space<vmem>>, vector<1x2x128xf32>,
      %cst_34 = arith.constant 0.000000e+00 : f32
      %37 = vector.broadcast %cst_34 : f32 to vector<2x128xf32>
      %c0_35 = arith.constant 0 : index
      %c0_36 = arith.constant 0 : index
      %c0_37 = arith.constant 0 : index
      %38 = vector.load %arg6[%c0_35, %c0_36, %c0_37] : memref<1x2x128xf32, #tpu.memory_space<vmem>>, vector<1x2x128xf32>
      %39 = vector.shape_cast %38 : vector<1x2x128xf32> to vector<2x128xf32>
      %40 = vector.shape_cast %37 : vector<2x128xf32> to vector<1x2x128xf32>
      tpu.vector_store %arg6[%c0_35, %c0_36, %c0_37], %40 {strides = array<i32>} : memref<1x2x128xf32, #tpu.memory_space<vmem>>, vector<1x2x128xf32>,
    } else {
    }
    %c0 = arith.constant 0 : index
    %c0_1 = arith.constant 0 : index
    %c0_2 = arith.constant 0 : index
    %3 = vector.load %arg2[%c0, %c0_1, %c0_2] : memref<2x8x128xf32, #tpu.memory_space<vmem>>, vector<2x8x128xf32>
    %c0_3 = arith.constant 0 : index
    %c0_4 = arith.constant 0 : index
    %c0_5 = arith.constant 0 : index
    %4 = vector.load %arg3[%c0_3, %c0_4, %c0_5] : memref<2x8x128xf32, #tpu.memory_space<vmem>>, vector<2x8x128xf32>
    %c0_6 = arith.constant 0 : index
    %c0_7 = arith.constant 0 : index
    %c0_8 = arith.constant 0 : index
    %5 = vector.load %arg4[%c0_6, %c0_7, %c0_8] : memref<1x2x128xf32, #tpu.memory_space<vmem>>, vector<1x2x128xf32>
    %6 = vector.shape_cast %5 : vector<1x2x128xf32> to vector<2x128xf32>
    %7 = arith.mulf %3, %4 : vector<2x8x128xf32>
    %cst = arith.constant dense<0.000000e+00> : vector<2x128xf32>
    %8 = vector.multi_reduction <add>, %7, %cst [1] : vector<2x8x128xf32> to vector<2x128xf32>
    %9 = arith.addf %6, %8 : vector<2x128xf32>
    %c0_9 = arith.constant 0 : index
    %c0_10 = arith.constant 0 : index
    %c0_11 = arith.constant 0 : index
    %10 = vector.load %arg4[%c0_9, %c0_10, %c0_11] : memref<1x2x128xf32, #tpu.memory_space<vmem>>, vector<1x2x128xf32>
    %11 = vector.shape_cast %10 : vector<1x2x128xf32> to vector<2x128xf32>
    %12 = vector.shape_cast %9 : vector<2x128xf32> to vector<1x2x128xf32>
    tpu.vector_store %arg4[%c0_9, %c0_10, %c0_11], %12 {strides = array<i32>} : memref<1x2x128xf32, #tpu.memory_space<vmem>>, vector<1x2x128xf32>,
    %c0_12 = arith.constant 0 : index
    %c0_13 = arith.constant 0 : index
    %c0_14 = arith.constant 0 : index
    %13 = vector.load %arg5[%c0_12, %c0_13, %c0_14] : memref<1x2x128xf32, #tpu.memory_space<vmem>>, vector<1x2x128xf32>
    %14 = vector.shape_cast %13 : vector<1x2x128xf32> to vector<2x128xf32>
    %15 = arith.mulf %3, %3 : vector<2x8x128xf32>
    %cst_15 = arith.constant dense<0.000000e+00> : vector<2x128xf32>
    %16 = vector.multi_reduction <add>, %15, %cst_15 [1] : vector<2x8x128xf32> to vector<2x128xf32>
    %17 = arith.addf %14, %16 : vector<2x128xf32>
    %c0_16 = arith.constant 0 : index
    %c0_17 = arith.constant 0 : index
    %c0_18 = arith.constant 0 : index
    %18 = vector.load %arg5[%c0_16, %c0_17, %c0_18] : memref<1x2x128xf32, #tpu.memory_space<vmem>>, vector<1x2x128xf32>
    %19 = vector.shape_cast %18 : vector<1x2x128xf32> to vector<2x128xf32>
    %20 = vector.shape_cast %17 : vector<2x128xf32> to vector<1x2x128xf32>
    tpu.vector_store %arg5[%c0_16, %c0_17, %c0_18], %20 {strides = array<i32>} : memref<1x2x128xf32, #tpu.memory_space<vmem>>, vector<1x2x128xf32>,
    %c0_19 = arith.constant 0 : index
    %c0_20 = arith.constant 0 : index
    %c0_21 = arith.constant 0 : index
    %21 = vector.load %arg6[%c0_19, %c0_20, %c0_21] : memref<1x2x128xf32, #tpu.memory_space<vmem>>, vector<1x2x128xf32>
    %22 = vector.shape_cast %21 : vector<1x2x128xf32> to vector<2x128xf32>
    %23 = arith.mulf %4, %4 : vector<2x8x128xf32>
    %cst_22 = arith.constant dense<0.000000e+00> : vector<2x128xf32>
    %24 = vector.multi_reduction <add>, %23, %cst_22 [1] : vector<2x8x128xf32> to vector<2x128xf32>
    %25 = arith.addf %22, %24 : vector<2x128xf32>
    %c0_23 = arith.constant 0 : index
    %c0_24 = arith.constant 0 : index
    %c0_25 = arith.constant 0 : index
    %26 = vector.load %arg6[%c0_23, %c0_24, %c0_25] : memref<1x2x128xf32, #tpu.memory_space<vmem>>, vector<1x2x128xf32>
    %27 = vector.shape_cast %26 : vector<1x2x128xf32> to vector<2x128xf32>
    %28 = vector.shape_cast %25 : vector<2x128xf32> to vector<1x2x128xf32>
    tpu.vector_store %arg6[%c0_23, %c0_24, %c0_25], %28 {strides = array<i32>} : memref<1x2x128xf32, #tpu.memory_space<vmem>>, vector<1x2x128xf32>,
    return
  }
  func.func @transform_0(%arg0: i32, %arg1: i32) -> (i32, i32, i32) {
    %c1_i32 = arith.constant 1 : i32
    %0 = arith.muli %arg0, %c1_i32 : i32
    %1 = arith.addi %0, %arg1 : i32
    %c0_i32 = arith.constant 0 : i32
    %2 = arith.minsi %1, %c0_i32 : i32
    %c0_i32_0 = arith.constant 0 : i32
    %c0_i32_1 = arith.constant 0 : i32
    %c0_i32_2 = arith.constant 0 : i32
    return %c0_i32_0, %2, %c0_i32_1 : i32, i32, i32
  }
  func.func @transform_1(%arg0: i32, %arg1: i32) -> (i32, i32, i32) {
    %c1_i32 = arith.constant 1 : i32
    %0 = arith.muli %arg0, %c1_i32 : i32
    %1 = arith.addi %0, %arg1 : i32
    %c0_i32 = arith.constant 0 : i32
    %2 = arith.minsi %1, %c0_i32 : i32
    %c0_i32_0 = arith.constant 0 : i32
    %c0_i32_1 = arith.constant 0 : i32
    %c0_i32_2 = arith.constant 0 : i32
    return %c0_i32_0, %2, %c0_i32_1 : i32, i32, i32
  }
  func.func @transform_2(%arg0: i32, %arg1: i32) -> (i32, i32, i32) {
    %c0_i32 = arith.constant 0 : i32
    %c0_i32_0 = arith.constant 0 : i32
    %c0_i32_1 = arith.constant 0 : i32
    return %arg0, %c0_i32, %c0_i32_0 : i32, i32, i32
  }
  func.func @transform_3(%arg0: i32, %arg1: i32) -> (i32, i32, i32) {
    %c0_i32 = arith.constant 0 : i32
    %c0_i32_0 = arith.constant 0 : i32
    %c0_i32_1 = arith.constant 0 : i32
    return %arg0, %c0_i32, %c0_i32_0 : i32, i32, i32
  }
  func.func @transform_4(%arg0: i32, %arg1: i32) -> (i32, i32, i32) {
    %c0_i32 = arith.constant 0 : i32
    %c0_i32_0 = arith.constant 0 : i32
    %c0_i32_1 = arith.constant 0 : i32
    return %arg0, %c0_i32, %c0_i32_0 : i32, i32, i32
  }
}

</mosaic_0001>

<bundles_post_ra>
// kernel: tpu_custom_call.1
= control target key start
LH: loop header
LB: loop body
LE: loop exit
PB: predicated region body
PF: predicated region fallthrough
CT: control target
= control target key end

     0   :  { %10 = vsyncpa [#allocation3], 0  ;;  %s379_s0 = inlined_call_operand.hbm [shape: f32[2,8,128], index: 0, kind: input, shape index: {}]   ;;  %s380_s1 = inlined_call_operand.hbm [shape: f32[2,8,128], index: 1, kind: input, shape index: {}]   ;;  %s381_s2 = inlined_call_operand.hbm [shape: f32[1,2,128], index: 2, kind: output, shape index: {0}]   ;;  %s382_s3 = inlined_call_operand.hbm [shape: f32[1,2,128], index: 3, kind: output, shape index: {1}]   ;;  %s383_s4 = inlined_call_operand.hbm [shape: f32[1,2,128], index: 4, kind: output, shape index: {2}]  }
   0x1   :  { %11 = vsyncpa [#allocation6], 0 }
   0x2   :  { %12 = vsyncpa [#allocation4], 0 }
   0x3   :  { %13 = vsyncpa [#allocation9], 0  ;;  %s23_s17 = sshll.u32 %s379_s0, 4  ;;  %s328_s18 = smov [#allocation2]   ;;  %s24_s17 = int_to_ptr.hbm [resolvable:$true] %s23_s17 }
   0x4   :  { %s25_s19 = sshll.u32 %s328_s18, 4  ;;  %s41_s22 = sshll.u32 %s380_s1, 4  ;;  %s26_s19 = int_to_ptr.vmem [resolvable:$true] %s25_s19  ;;  %s42_s22 = int_to_ptr.hbm [resolvable:$true] %s41_s22 }
   0x5   :  { %s329_s23 = smov 128   ;;  %s330_s24 = smov 8  }
   0x6   :  { %31 = dma.hbm_to_vmem [thread:$0]  %s24_s17, 256, %s26_s19, [#allocation3], %s329_s23, %s329_s23, %s330_s24  }
   0x7   :  { %s331_s25 = smov [#allocation5]  }
   0x8   :  { %s43_s26 = sshll.u32 %s331_s25, 4  ;;  %s44_s26 = int_to_ptr.vmem [resolvable:$true] %s43_s26 }
   0x9   :  { %49 = dma.hbm_to_vmem [thread:$0]  %s42_s22, 256, %s44_s26, [#allocation6], %s329_s23, %s329_s23, %s330_s24  }
   0xa   :  { %320 = dma.done.wait [#allocation3], 256  }
   0xb   :  { %321 = vsyncadd [#allocation3], 4294967040 }
   0xc   :  { %322 = dma.done.wait [#allocation6], 256  }
   0xd   :  { %323 = vsyncadd [#allocation6], 4294967040  ;;  %v332_v0 = vmov 0.0   ;;  %v71_v1 = vld [vmem:[#allocation2] sm:$0xff]  ;;  %v72_v2 = vld [vmem:[#allocation2 + $0x8] sm:$0xff]  ;;  %vm92_vm0 = vcmask 1041409  }
   0xe   :  { %69 = vst [vmem:[#allocation8] sm:$0x3] %v332_v0  ;;  %v73_v3 = vld [vmem:[#allocation5] sm:$0xff]  ;;  %v98_v4 = vmul.f32 %v71_v1, %v71_v1  ;;  %v99_v5 = vmul.f32 %v72_v2, %v72_v2  ;;  %v74_v6 = vld [vmem:[#allocation5 + $0x8] sm:$0xff]  ;;  %s333_s0 = smov [#allocation8]   ;;  %s157_s29 = sshll.u32 %s382_s3, 4  ;;  %s158_s29 = int_to_ptr.hbm [resolvable:$true] %s157_s29 }
   0xf   :  { %68 = vst [vmem:[#allocation7] sm:$0x3] %v332_v0  ;;  %v76_v7 = vmul.f32 %v73_v3, %v71_v1  ;;  %v119_v8 = vmul.f32 %v73_v3, %v73_v3  ;;  %v77_v9 = vmul.f32 %v74_v6, %v72_v2  ;;  %v120_v10 = vmul.f32 %v74_v6, %v74_v6  ;;  %s155_s1 = sshll.u32 %s333_s0, 4  ;;  %s334_s30 = smov [#allocation7]   ;;  %s156_s1 = int_to_ptr.vmem [resolvable:$true] %s155_s1 }
  0x10   :  { %70 = vst [vmem:[#allocation10] sm:$0x3] %v332_v0  ;;  %v100_v11 = vrot.slane %v98_v4, 4  ;;  %v106_v12 = vrot.slane %v99_v5, 4  ;;  %s144_s5 = sshll.u32 %s334_s30, 4  ;;  %s146_s8 = sshll.u32 %s381_s2, 4  ;;  %s145_s5 = int_to_ptr.vmem [resolvable:$true] %s144_s5  ;;  %s147_s8 = int_to_ptr.hbm [resolvable:$true] %s146_s8 }
  0x11   :  { %v78_v13 = vrot.slane %v76_v7, 4  ;;  %v121_v14 = vrot.slane %v119_v8, 4  ;;  %v84_v15 = vrot.slane %v77_v9, 4  ;;  %v127_v16 = vrot.slane %v120_v10, 4  ;;  %s335_s9 = smov [#allocation10]   ;;  %s168_s13 = sshll.u32 %s383_s4, 4  ;;  %s169_s13 = int_to_ptr.hbm [resolvable:$true] %s168_s13 }
  0x12   :  { %v101_v17 = vadd.f32 %v100_v11, %v98_v4  ;;  %v107_v18 = vadd.f32 %v106_v12, %v99_v5  ;;  %s166_s10 = sshll.u32 %s335_s9, 4  ;;  %s167_s10 = int_to_ptr.vmem [resolvable:$true] %s166_s10 }
  0x13   :  { %v79_v19 = vadd.f32 %v78_v13, %v76_v7  ;;  %v122_v20 = vadd.f32 %v121_v14, %v119_v8  ;;  %v85_v21 = vadd.f32 %v84_v15, %v77_v9  ;;  %v128_v22 = vadd.f32 %v127_v16, %v120_v10 }
  0x14   :  { %v102_v23 = vrot.slane %v101_v17, 2  ;;  %v108_v24 = vrot.slane %v107_v18, 2 }
  0x15   :  { %v80_v25 = vrot.slane %v79_v19, 2  ;;  %v123_v26 = vrot.slane %v122_v20, 2  ;;  %v86_v27 = vrot.slane %v85_v21, 2  ;;  %v129_v28 = vrot.slane %v128_v22, 2  ;;  %v97_v41 = vld [vmem:[#allocation8] sm:$0x3] }
  0x16   :  { %v103_v29 = vadd.f32 %v102_v23, %v101_v17  ;;  %v109_v30 = vadd.f32 %v108_v24, %v107_v18  ;;  %v75_v46 = vld [vmem:[#allocation7] sm:$0x3] }
  0x17   :  { %v81_v31 = vadd.f32 %v80_v25, %v79_v19  ;;  %v124_v32 = vadd.f32 %v123_v26, %v122_v20  ;;  %v87_v33 = vadd.f32 %v86_v27, %v85_v21  ;;  %v130_v34 = vadd.f32 %v129_v28, %v128_v22  ;;  %v118_v48 = vld [vmem:[#allocation10] sm:$0x3] }
  0x18   :  { %v104_v35 = vrot.slane %v103_v29, 1  ;;  %v110_v36 = vrot.slane %v109_v30, 1 }
  0x19   :  { %v82_v37 = vrot.slane %v81_v31, 1  ;;  %v125_v38 = vrot.slane %v124_v32, 1  ;;  %v88_v39 = vrot.slane %v87_v33, 1  ;;  %v131_v40 = vrot.slane %v130_v34, 1 }
  0x1a   :  { %v105_v42 = vadd.f32 %v104_v35, %v103_v29  ;;  %v111_v43 = vadd.f32 %v110_v36, %v109_v30 }
  0x1b   :  { %v83_v44 = vadd.f32 %v82_v37, %v81_v31  ;;  %v126_v45 = vadd.f32 %v125_v38, %v124_v32  ;;  %v89_v47 = vadd.f32 %v88_v39, %v87_v33  ;;  %v132_v49 = vadd.f32 %v131_v40, %v130_v34 }
  0x1c   :  { %v114_v50 = vsel %vm92_vm0, %v111_v43, %v105_v42 }
  0x1d   :  { %v116_v51 = vadd.f32 %v114_v50, %v97_v41  ;;  %v93_v52 = vsel %vm92_vm0, %v89_v47, %v83_v44  ;;  %v135_v53 = vsel %vm92_vm0, %v132_v49, %v126_v45 }
  0x1e   :  { %v95_v54 = vadd.f32 %v93_v52, %v75_v46  ;;  %v137_v55 = vadd.f32 %v135_v53, %v118_v48 }
  0x1f   :  { %117 = vst [vmem:[#allocation8] sm:$0x3] %v116_v51 }
  0x20   :  { %96 = vst [vmem:[#allocation7] sm:$0x3] %v95_v54  ;;  %160 = dma.vmem_to_hbm [thread:$0]  %s156_s1, 32, %s158_s29, [#allocation9]  }
  0x21   :  { %138 = vst [vmem:[#allocation10] sm:$0x3] %v137_v55  ;;  %149 = dma.vmem_to_hbm [thread:$0]  %s145_s5, 32, %s147_s8, [#allocation4]  }
  0x22   :  { %171 = dma.vmem_to_hbm [thread:$0]  %s167_s10, 32, %s169_s13, [#allocation9]  }
  0x23   :  { %324 = dma.done.wait [#allocation4], 32  }
  0x24   :  { %325 = vsyncadd [#allocation4], 4294967264 }
  0x25   :  { %326 = dma.done.wait [#allocation9], 64  }
  0x26   :  { %327 = vsyncadd [#allocation9], 4294967232 }
  0x27   :  { %184 = vsyncpa [#allocation3], 1 }
  0x28   :  { %185 = vsyncpa [#allocation6], 1 }
  0x29   :  { %186 = vsyncpa [#allocation4], 1 }
  0x2a   :  { %187 = vsyncpa [#allocation9], 1 }

</bundles_post_ra>
